<compile_context>
chip_gen: v6e
topology: v6e:2x2x1
jax: 0.10.0
libtpu: 0.0.40
codegen_flags: <defaults>
</compile_context>

<pallas_src>
import math

import jax
import jax.numpy as jnp
from jax.experimental import pallas as pl
from jax.experimental.pallas import tpu as pltpu

# ----------------------------- configuration ---------------------------------
LAYERS = [32, 64, 64, 4]          # [state_dim, h1, h2, n_actions]
ACTION_DIM = 8                    # parametric dueling DQN
STATE_DIM = LAYERS[0]
H1, H2 = LAYERS[1], LAYERS[2]
HALF = LAYERS[-2] // 2            # layers[-2] / 2
N_ACTIONS = LAYERS[-1]
BATCH = 2

LANE = 128                        # slab lane width / padded feature width
VA_LANE0 = 1                      # head2 lanes [1, 1+N_ACTIONS) = value + advantage
MEAN_LANE = 1 + N_ACTIONS         # head2 lane 5 = per-sample advantage mean


def _round8(n):
    return ((n + 7) // 8) * 8


# --------------------- packed-weight slab row layout --------------------------
# Every block starts on an 8-row boundary and spans the full 128 lanes.
R_W0 = 0                                  # (32, 128): w0 in cols [0, H1)
R_W1 = R_W0 + _round8(STATE_DIM)          # (128,128): w1 in rows [0,H1) cols [0,H2)
R_WH1 = R_W1 + LANE                       # (128,128): fused head fc1
                                          #   rows [0,H2)         cols [0,HALF)      = wv1
                                          #   rows [0,H2)         cols [HALF,2HALF)  = wa1 (h part)
                                          #   rows [H2,H2+ACT)    cols [HALF,2HALF)  = wa1 (action part)
R_WH2 = R_WH1 + LANE                      # (128,128): fused head fc2
                                          #   rows [0,HALF)    cols 1..4 = wv2 replicated
                                          #   rows [HALF,2HALF)cols 1..4 = wa2; col 5 = mean(wa2, axis=1)
R_B = R_WH2 + LANE                        # (8,  128): bias rows 0..3 = b0, b1, [bv1|ba1], fused head2 bias
N_ROWS = R_B + 8                          # 424 rows total (~212 KiB f32)


# ------------------------------- kernel --------------------------------------
def dueling_q_kernel(state_ref, actsh_ref, slab_ref, out_ref):
    state = state_ref[...]                                  # (TB, 32)
    actsh = actsh_ref[...]                                  # (TB, 128) action in lanes [H2, H2+8)

    # Static, 8-sublane-aligned, full-lane-width views of the packed slab.
    w0 = slab_ref[pl.ds(R_W0, STATE_DIM), :]                # (32, 128)
    w1 = slab_ref[pl.ds(R_W1, LANE), :]                     # (128,128)
    wh1 = slab_ref[pl.ds(R_WH1, LANE), :]                   # (128,128) fused head fc1 (+ action rows)
    wh2 = slab_ref[pl.ds(R_WH2, LANE), :]                   # (128,128) fused head fc2 (value/adv/mean)
    biases = slab_ref[pl.ds(R_B, 8), :]                     # (8,  128)
    b0 = biases[0:1, :]
    b1 = biases[1:2, :]
    bh1 = biases[2:3, :]
    bh2 = biases[3:4, :]

    # shared trunk (activations[:-1] == ['relu', 'relu']); pad lanes stay exactly 0
    h = jnp.maximum(
        jnp.dot(state, w0, preferred_element_type=jnp.float32) + b0, 0.0)    # (TB,128)
    h = jnp.maximum(
        jnp.dot(h, w1, preferred_element_type=jnp.float32) + b1, 0.0)        # (TB,128)

    # fused head fc1 with the action contraction folded in (single MXU push):
    # lanes [0,HALF) = value-head hidden, lanes [HALF,2*HALF) = adv-head hidden.
    head1 = jnp.maximum(
        jnp.dot(h + actsh, wh1, preferred_element_type=jnp.float32) + bh1, 0.0)

    # fused head fc2: lanes 1..4 = value + advantage, lane 5 = per-sample adv mean.
    # Store the full lane-dense vreg; global-mean subtraction happens in the wrapper.
    out_ref[...] = jnp.dot(head1, wh2, preferred_element_type=jnp.float32) + bh2


# ------------------------------ wrapper ---------------------------------------
def dueling_q_forward(x, slab, *, batch_tile=1024):
    """x: (B, state_dim + action_dim) float32; slab: packed (N_ROWS, 128) weights."""
    b = x.shape[0]
    state = x[:, :STATE_DIM].astype(jnp.float32)
    action = x[:, STATE_DIM:].astype(jnp.float32)
    # Action shifted into lanes [H2, H2+ACTION_DIM) so it rides the head-1 matmul.
    actsh = jnp.zeros((b, LANE), jnp.float32).at[:, H2:H2 + ACTION_DIM].set(action)

    if b <= batch_tile:
        tb, nt, b_pad = b, 1, b
    else:
        tb = batch_tile
        nt = pl.cdiv(b, tb)
        b_pad = nt * tb
        state = jnp.pad(state, ((0, b_pad - b), (0, 0)))
        actsh = jnp.pad(actsh, ((0, b_pad - b), (0, 0)))

    head2 = pl.pallas_call(
        dueling_q_kernel,
        out_shape=jax.ShapeDtypeStruct((b_pad, LANE), jnp.float32),
        grid=(nt,),
        in_specs=[
            pl.BlockSpec((tb, STATE_DIM), lambda i: (i, 0)),
            pl.BlockSpec((tb, LANE), lambda i: (i, 0)),
            # Constant index_map: slab is DMA'd once and stays resident across tiles.
            pl.BlockSpec((N_ROWS, LANE), lambda i: (0, 0)),
        ],
        out_specs=pl.BlockSpec((tb, LANE), lambda i: (i, 0)),
        compiler_params=pltpu.CompilerParams(dimension_semantics=("parallel",)),
    )(state, actsh, slab)

    head2 = head2[:b]
    # Global scalar mean over ALL B x N_ACTIONS advantage entries
    # == mean over batch of the per-sample means emitted in MEAN_LANE.
    adv_mean = jnp.mean(head2[:, MEAN_LANE])
    return head2[:, VA_LANE0:VA_LANE0 + N_ACTIONS] - adv_mean


# --------------------------- parameter init -----------------------------------
def init_params(key):
    """Deterministic synthetic init matching the PyTorch module's shapes.

    Shared layers use guassian_fill_w_gain (relu gain): std = sqrt(2)*sqrt(1/dim_in),
    bias = 0.  Head layers mimic nn.Linear default: U(-1/sqrt(fan_in), 1/sqrt(fan_in)).
    Weights are stored transposed, i.e. (in, out).
    """
    keys = jax.random.split(key, 12)

    def gauss_w(k, fan_in, fan_out):
        std = math.sqrt(2.0) * math.sqrt(1.0 / fan_in)
        return std * jax.random.normal(k, (fan_in, fan_out), jnp.float32)

    def uni_w(k, fan_in, fan_out):
        bound = 1.0 / math.sqrt(fan_in)
        return jax.random.uniform(k, (fan_in, fan_out), jnp.float32, -bound, bound)

    def uni_b(k, fan_in, fan_out):
        bound = 1.0 / math.sqrt(fan_in)
        return jax.random.uniform(k, (1, fan_out), jnp.float32, -bound, bound)

    return {
        # shared trunk
        "w0": gauss_w(keys[0], STATE_DIM, H1),
        "b0": jnp.zeros((1, H1), jnp.float32),
        "w1": gauss_w(keys[1], H1, H2),
        "b1": jnp.zeros((1, H2), jnp.float32),
        # value head: Linear(h2, half) -> ReLU -> Linear(half, 1)
        "wv1": uni_w(keys[2], H2, HALF),
        "bv1": uni_b(keys[3], H2, HALF),
        "wv2": uni_w(keys[4], HALF, 1),
        "bv2": uni_b(keys[5], HALF, 1),
        # advantage head: Linear(h2+action_dim, half) -> ReLU -> Linear(half, n_actions)
        "wa1": uni_w(keys[6], H2 + ACTION_DIM, HALF),
        "ba1": uni_b(keys[7], H2 + ACTION_DIM, HALF),
        "wa2": uni_w(keys[8], HALF, N_ACTIONS),
        "ba2": uni_b(keys[9], HALF, N_ACTIONS),
    }


def pack_params(p):
    """Pack all weights/biases into one zero-padded (N_ROWS, 128) f32 slab.

    Invariant that makes the 128-wide contractions exact: every pad column /
    pad bias lane is zero, and relu(0) = 0 keeps pad activation lanes zero.
    """
    slab = jnp.zeros((N_ROWS, LANE), jnp.float32)
    # trunk
    slab = slab.at[R_W0:R_W0 + STATE_DIM, 0:H1].set(p["w0"])
    slab = slab.at[R_W1:R_W1 + H1, 0:H2].set(p["w1"])
    # fused head fc1: cols [0,HALF) = value fc1, cols [HALF,2*HALF) = adv fc1
    slab = slab.at[R_WH1:R_WH1 + H2, 0:HALF].set(p["wv1"])
    slab = slab.at[R_WH1:R_WH1 + H2, HALF:2 * HALF].set(p["wa1"][:H2, :])
    # adv fc1 action part folded into rows [H2, H2+ACTION_DIM) (action rides lanes [H2,H2+8))
    slab = slab.at[R_WH1 + H2:R_WH1 + H2 + ACTION_DIM, HALF:2 * HALF].set(p["wa1"][H2:, :])
    # fused head fc2:
    #   cols 1..N_ACTIONS: value (wv2 replicated) + advantage (wa2)
    #   col  1+N_ACTIONS : per-sample advantage mean (row-mean of wa2)
    slab = slab.at[R_WH2:R_WH2 + HALF, VA_LANE0:VA_LANE0 + N_ACTIONS].set(
        jnp.tile(p["wv2"], (1, N_ACTIONS)))
    slab = slab.at[R_WH2 + HALF:R_WH2 + 2 * HALF, VA_LANE0:VA_LANE0 + N_ACTIONS].set(p["wa2"])
    slab = slab.at[R_WH2 + HALF:R_WH2 + 2 * HALF, MEAN_LANE:MEAN_LANE + 1].set(
        jnp.mean(p["wa2"], axis=1, keepdims=True))
    # biases
    slab = slab.at[R_B + 0, 0:H1].set(p["b0"][0])
    slab = slab.at[R_B + 1, 0:H2].set(p["b1"][0])
    slab = slab.at[R_B + 2, 0:HALF].set(p["bv1"][0])
    slab = slab.at[R_B + 2, HALF:2 * HALF].set(p["ba1"][0])
    slab = slab.at[R_B + 3, VA_LANE0:VA_LANE0 + N_ACTIONS].set(p["bv2"][0, 0] + p["ba2"][0])
    slab = slab.at[R_B + 3, MEAN_LANE].set(jnp.mean(p["ba2"]))
    return slab


# -------------------------- pure-JAX reference ---------------------------------
def reference_forward(x, p):
    state, action = x[:, :STATE_DIM], x[:, STATE_DIM:]
    h = jnp.maximum(state @ p["w0"] + p["b0"], 0.0)
    h = jnp.maximum(h @ p["w1"] + p["b1"], 0.0)
    value = jnp.maximum(h @ p["wv1"] + p["bv1"], 0.0) @ p["wv2"] + p["bv2"]
    xa = jnp.concatenate([h, action], axis=1)
    adv = jnp.maximum(xa @ p["wa1"] + p["ba1"], 0.0) @ p["wa2"] + p["ba2"]
    return value + adv - jnp.mean(adv)


# --------------------------------- main ----------------------------------------
if __name__ == "__main__":
    key = jax.random.PRNGKey(0)
    k_x, k_p = jax.random.split(key)

    x = jax.random.normal(k_x, (BATCH, STATE_DIM + ACTION_DIM), jnp.float32)
    params = init_params(k_p)
    slab = pack_params(params)

    out = dueling_q_forward(x, slab)
    out = jax.block_until_ready(out)

    ref = reference_forward(x, params)
    assert out.shape == (BATCH, N_ACTIONS), out.shape
    assert jnp.allclose(out, ref, rtol=1e-4, atol=1e-4), (out, ref)

    print("KERNEL_OK")
</pallas_src>

<mosaic_0001>
module attributes {stable_mosaic.version = 11 : i64} {
  func.func @dueling_q_kernel(%arg0: i32, %arg1: memref<2x32xf32, #tpu.memory_space<vmem>>, %arg2: memref<2x128xf32, #tpu.memory_space<vmem>>, %arg3: memref<424x128xf32, #tpu.memory_space<vmem>>, %arg4: memref<2x128xf32, #tpu.memory_space<vmem>>) attributes {dimension_semantics = [#tpu.dimension_semantics<parallel>], iteration_bounds = array<i64: 1>, scalar_prefetch = 0 : i64, scratch_operands = 0 : i64, tpu.core_type = #tpu.core_type<tc>, window_params = [{transform_indices = @transform_0, window_bounds = array<i64: 2, 32>}, {transform_indices = @transform_1, window_bounds = array<i64: 2, 128>}, {pipeline_mode = #tpu.pipeline_mode<synchronous>, transform_indices = @transform_2, window_bounds = array<i64: 424, 128>}, {transform_indices = @transform_3, window_bounds = array<i64: 2, 128>}]} {
    %c0 = arith.constant 0 : index
    %c0_0 = arith.constant 0 : index
    %0 = vector.load %arg1[%c0, %c0_0] : memref<2x32xf32, #tpu.memory_space<vmem>>, vector<2x32xf32>
    %c0_1 = arith.constant 0 : index
    %c0_2 = arith.constant 0 : index
    %1 = vector.load %arg2[%c0_1, %c0_2] : memref<2x128xf32, #tpu.memory_space<vmem>>, vector<2x128xf32>
    %c0_3 = arith.constant 0 : index
    %c0_4 = arith.constant 0 : index
    %2 = vector.load %arg3[%c0_3, %c0_4] : memref<424x128xf32, #tpu.memory_space<vmem>>, vector<32x128xf32>
    %c32 = arith.constant 32 : index
    %c0_5 = arith.constant 0 : index
    %3 = vector.load %arg3[%c32, %c0_5] : memref<424x128xf32, #tpu.memory_space<vmem>>, vector<128x128xf32>
    %c160 = arith.constant 160 : index
    %c0_6 = arith.constant 0 : index
    %4 = vector.load %arg3[%c160, %c0_6] : memref<424x128xf32, #tpu.memory_space<vmem>>, vector<128x128xf32>
    %c288 = arith.constant 288 : index
    %c0_7 = arith.constant 0 : index
    %5 = vector.load %arg3[%c288, %c0_7] : memref<424x128xf32, #tpu.memory_space<vmem>>, vector<128x128xf32>
    %c416 = arith.constant 416 : index
    %c0_8 = arith.constant 0 : index
    %6 = vector.load %arg3[%c416, %c0_8] : memref<424x128xf32, #tpu.memory_space<vmem>>, vector<8x128xf32>
    %7 = vector.extract_strided_slice %6 {offsets = [0, 0], sizes = [1, 128], strides = [1, 1]} : vector<8x128xf32> to vector<1x128xf32>
    %8 = vector.extract_strided_slice %6 {offsets = [1, 0], sizes = [1, 128], strides = [1, 1]} : vector<8x128xf32> to vector<1x128xf32>
    %9 = vector.extract_strided_slice %6 {offsets = [2, 0], sizes = [1, 128], strides = [1, 1]} : vector<8x128xf32> to vector<1x128xf32>
    %10 = vector.extract_strided_slice %6 {offsets = [3, 0], sizes = [1, 128], strides = [1, 1]} : vector<8x128xf32> to vector<1x128xf32>
    %cst = arith.constant dense<0.000000e+00> : vector<2x128xf32>
    %11 = tpu.matmul %0, %2, %cst {dimension_numbers = #tpu.dot_dimension_numbers<[1], [0], [0], [1], [0, 0, 1, 1], [], []>} : vector<2x32xf32>, vector<32x128xf32>, vector<2x128xf32> -> vector<2x128xf32>
    %12 = vector.broadcast %7 : vector<1x128xf32> to vector<2x128xf32>
    %13 = arith.addf %11, %12 : vector<2x128xf32>
    %cst_9 = arith.constant 0.000000e+00 : f32
    %14 = vector.broadcast %cst_9 : f32 to vector<2x128xf32>
    %15 = arith.maximumf %13, %14 : vector<2x128xf32>
    %cst_10 = arith.constant dense<0.000000e+00> : vector<2x128xf32>
    %16 = tpu.matmul %15, %3, %cst_10 {dimension_numbers = #tpu.dot_dimension_numbers<[1], [0], [0], [1], [0, 0, 1, 1], [], []>} : vector<2x128xf32>, vector<128x128xf32>, vector<2x128xf32> -> vector<2x128xf32>
    %17 = vector.broadcast %8 : vector<1x128xf32> to vector<2x128xf32>
    %18 = arith.addf %16, %17 : vector<2x128xf32>
    %cst_11 = arith.constant 0.000000e+00 : f32
    %19 = vector.broadcast %cst_11 : f32 to vector<2x128xf32>
    %20 = arith.maximumf %18, %19 : vector<2x128xf32>
    %21 = arith.addf %20, %1 : vector<2x128xf32>
    %cst_12 = arith.constant dense<0.000000e+00> : vector<2x128xf32>
    %22 = tpu.matmul %21, %4, %cst_12 {dimension_numbers = #tpu.dot_dimension_numbers<[1], [0], [0], [1], [0, 0, 1, 1], [], []>} : vector<2x128xf32>, vector<128x128xf32>, vector<2x128xf32> -> vector<2x128xf32>
    %23 = vector.broadcast %9 : vector<1x128xf32> to vector<2x128xf32>
    %24 = arith.addf %22, %23 : vector<2x128xf32>
    %cst_13 = arith.constant 0.000000e+00 : f32
    %25 = vector.broadcast %cst_13 : f32 to vector<2x128xf32>
    %26 = arith.maximumf %24, %25 : vector<2x128xf32>
    %cst_14 = arith.constant dense<0.000000e+00> : vector<2x128xf32>
    %27 = tpu.matmul %26, %5, %cst_14 {dimension_numbers = #tpu.dot_dimension_numbers<[1], [0], [0], [1], [0, 0, 1, 1], [], []>} : vector<2x128xf32>, vector<128x128xf32>, vector<2x128xf32> -> vector<2x128xf32>
    %28 = vector.broadcast %10 : vector<1x128xf32> to vector<2x128xf32>
    %29 = arith.addf %27, %28 : vector<2x128xf32>
    %c0_15 = arith.constant 0 : index
    %c0_16 = arith.constant 0 : index
    %30 = vector.load %arg4[%c0_15, %c0_16] : memref<2x128xf32, #tpu.memory_space<vmem>>, vector<2x128xf32>
    tpu.vector_store %arg4[%c0_15, %c0_16], %29 {strides = array<i32>} : memref<2x128xf32, #tpu.memory_space<vmem>>, vector<2x128xf32>,
    return
  }
  func.func @transform_0(%arg0: i32) -> (i32, i32) {
    %c0_i32 = arith.constant 0 : i32
    %c0_i32_0 = arith.constant 0 : i32
    return %arg0, %c0_i32 : i32, i32
  }
  func.func @transform_1(%arg0: i32) -> (i32, i32) {
    %c0_i32 = arith.constant 0 : i32
    %c0_i32_0 = arith.constant 0 : i32
    return %arg0, %c0_i32 : i32, i32
  }
  func.func @transform_2(%arg0: i32) -> (i32, i32) {
    %c0_i32 = arith.constant 0 : i32
    %c0_i32_0 = arith.constant 0 : i32
    %c0_i32_1 = arith.constant 0 : i32
    return %c0_i32, %c0_i32_0 : i32, i32
  }
  func.func @transform_3(%arg0: i32) -> (i32, i32) {
    %c0_i32 = arith.constant 0 : i32
    %c0_i32_0 = arith.constant 0 : i32
    return %arg0, %c0_i32 : i32, i32
  }
}

</mosaic_0001>

<bundles_post_ra>
// kernel: tpu_custom_call.1
= control target key start
LH: loop header
LB: loop body
LE: loop exit
PB: predicated region body
PF: predicated region fallthrough
CT: control target
= control target key end

     0   :  { %8 = vsyncpa [#allocation3], 0  ;;  %s807_s0 = inlined_call_operand.hbm [shape: f32[2,32], index: 0, kind: input, shape index: {}]   ;;  %s808_s1 = inlined_call_operand.hbm [shape: f32[2,128], index: 1, kind: input, shape index: {}]   ;;  %s809_s2 = inlined_call_operand.hbm [shape: f32[424,128], index: 2, kind: input, shape index: {}]   ;;  %s810_s3 = inlined_call_operand.hbm [shape: f32[2,128], index: 3, kind: output, shape index: {}]  }
   0x1   :  { %9 = vsyncpa [#allocation6], 0 }
   0x2   :  { %10 = vsyncpa [#allocation4], 0  ;;  %s695_s12 = smov [#allocation5]   ;;  %s696_s14 = smov [#allocation2]  }
   0x3   :  { %s27_s13 = sshll.u32 %s695_s12, 4  ;;  %s17_s15 = sshll.u32 %s696_s14, 4  ;;  %s28_s13 = int_to_ptr.vmem [resolvable:$true] %s27_s13  ;;  %s18_s15 = int_to_ptr.vmem [resolvable:$true] %s17_s15 }
   0x4   :  { %s617_s16 = scalar_lea.vmem %s28_s13, 32  ;;  %p622_p1 = scmp.lt.s32.totalorder %s28_s13, %s28_s13 }
   0x5   :  { %p618_p0 = scmp.ne.s32.totalorder %s28_s13, %s617_s16  ;;  %p623_p2 = scmp.lt.s32.totalorder %s617_s16, %s617_s16 }
   0x7   :  { %p624_p3 = por %p623_p2, %p622_p1 }
   0x9   :  { %p625_p4 = pnand %p624_p3, %p618_p0 }
   0xb   :  { %628 = shalt.err (!%p625_p4)
}
   0xc   :  { %30 = dma.hbm_to_vmem [thread:$0]  %s808_s1, 32, %s28_s13, [#allocation6]  }
   0xd   :  { %s637_s19 = scalar_lea.vmem %s18_s15, 32  ;;  %p642_p6 = scmp.lt.s32.totalorder %s18_s15, %s18_s15 }
   0xe   :  { %p638_p5 = scmp.ne.s32.totalorder %s18_s15, %s637_s19  ;;  %p643_p7 = scmp.lt.s32.totalorder %s637_s19, %s637_s19 }
  0x10   :  { %p644_p8 = por %p643_p7, %p642_p6 }
  0x12   :  { %p645_p9 = pnand %p644_p8, %p638_p5 }
  0x14   :  { %648 = shalt.err (!%p645_p9)
}
  0x15   :  { %20 = dma.hbm_to_vmem [thread:$0]  %s807_s0, 32, %s18_s15, [#allocation3]  }
  0x16   :  { %s697_s22 = smov [#allocation7]  }
  0x17   :  { %s36_s23 = sshll.u32 %s697_s22, 4  ;;  %s37_s23 = int_to_ptr.vmem [resolvable:$true] %s36_s23 }
  0x18   :  { %s657_s24 = scalar_lea.vmem %s37_s23, 6784  ;;  %p662_p11 = scmp.lt.s32.totalorder %s37_s23, %s37_s23 }
  0x19   :  { %p658_p10 = scmp.ne.s32.totalorder %s37_s23, %s657_s24  ;;  %p663_p12 = scmp.lt.s32.totalorder %s657_s24, %s657_s24 }
  0x1b   :  { %p664_p13 = por %p663_p12, %p662_p11 }
  0x1d   :  { %p665_p0 = pnand %p664_p13, %p658_p10 }
  0x1f   :  { %668 = shalt.err (!%p665_p0)
}
  0x20   :  { %s698_s1 = smov 128   ;;  %s699_s25 = smov 8  }
  0x21   :  { %42 = dma.hbm_to_vmem [thread:$0]  %s809_s2, 6784, %s37_s23, [#allocation6], %s698_s1, %s698_s1, %s699_s25  }
  0x22   :  { %689 = dma.done.wait [#allocation3], 32  }
  0x23   :  { %690 = vsyncadd [#allocation3], 4294967264 }
  0x24   :  { %691 = dma.done.wait [#allocation6], 6816  }
  0x25   :  { %692 = vsyncadd [#allocation6], 4294960480  ;;  %v700_v0 = vmov 0.0   ;;  %vm701_vm0 = vmmov 0   ;;  %v57_v1 = vld [vmem:[#allocation7 + $0x18] sm:$0xff]  ;;  %v56_v2 = vld [vmem:[#allocation7 + $0x10] sm:$0xff]  ;;  %v107_v34 = vlaneseq }
  0x26   :  { %485 = vmatprep.subr.mxu0 %v700_v0  ;;  %493 = vmatprep.mubr.msk.f32.mxu0 %vm701_vm0, %v700_v0  ;;  %v73_v3 = vld [vmem:[#allocation7 + $0x98] sm:$0xff]  ;;  %v55_v4 = vld [vmem:[#allocation7 + $0x8] sm:$0xff]  ;;  %v72_v5 = vld [vmem:[#allocation7 + $0x90] sm:$0xff]  ;;  %vm111_vm1 = vcmask 261120   ;;  %s702_s0 = smov [#allocation8]  }
  0x27   :  { %496 = vmatprep.subr.mxu1 %v700_v0  ;;  %528 = vmatprep.mubr.msk.f32.mxu1 %vm701_vm0, %v700_v0  ;;  %v71_v6 = vld [vmem:[#allocation7 + $0x88] sm:$0xff]  ;;  %v54_v7 = vld [vmem:[#allocation7] sm:$0xff]  ;;  %v52_v8 = vld [vmem:[#allocation2] sm:$0x3]  ;;  %v772_v35 = vshrl.u32 %v107_v34, 7  ;;  %s418_s2 = sshll.u32 %s702_s0, 4  ;;  %s419_s2 = int_to_ptr.vmem [resolvable:$true] %s418_s2 }
  0x28   :  { %486 = vmatpush3.msra.mxu0 %v57_v1  ;;  %497 = vmatpush3.msra.mxu1 %v73_v3  ;;  %v70_v9 = vld [vmem:[#allocation7 + $0x80] sm:$0xff]  ;;  %v69_v10 = vld [vmem:[#allocation7 + $0x78] sm:$0xff]  ;;  %v68_v11 = vld [vmem:[#allocation7 + $0x70] sm:$0xff]  ;;  %s669_s28 = scalar_lea.vmem %s419_s2, 32  ;;  %p674_p2 = scmp.lt.s32.totalorder %s419_s2, %s419_s2 }
  0x29   :  { %487 = vmatprep.subr.mxu0 %v700_v0  ;;  %498 = vmatprep.subr.mxu1 %v700_v0  ;;  %v67_v12 = vld [vmem:[#allocation7 + $0x68] sm:$0xff]  ;;  %v66_v13 = vld [vmem:[#allocation7 + $0x60] sm:$0xff]  ;;  %v65_v14 = vld [vmem:[#allocation7 + $0x58] sm:$0xff]  ;;  %v109_v36 = vsub.s32 0, %v772_v35  ;;  %v188_v60 = vsub.s32 1, %v772_v35  ;;  %p670_p1 = scmp.ne.s32.totalorder %s419_s2, %s669_s28  ;;  %p675_p3 = scmp.lt.s32.totalorder %s669_s28, %s669_s28 }
  0x2a   :  { %488 = vmatpush3.msra.mxu0 %v56_v2  ;;  %499 = vmatpush3.msra.mxu1 %v72_v5  ;;  %v64_v15 = vld [vmem:[#allocation7 + $0x50] sm:$0xff]  ;;  %v63_v16 = vld [vmem:[#allocation7 + $0x48] sm:$0xff]  ;;  %v62_v17 = vld [vmem:[#allocation7 + $0x40] sm:$0xff] }
  0x2b   :  { %489 = vmatprep.subr.mxu0 %v700_v0  ;;  %500 = vmatprep.subr.mxu1 %v700_v0  ;;  %v61_v18 = vld [vmem:[#allocation7 + $0x38] sm:$0xff]  ;;  %v60_v19 = vld [vmem:[#allocation7 + $0x30] sm:$0xff]  ;;  %v59_v20 = vld [vmem:[#allocation7 + $0x28] sm:$0xff]  ;;  %p676_p4 = por %p675_p3, %p674_p2 }
  0x2c   :  { %490 = vmatpush3.msra.mxu0 %v55_v4  ;;  %501 = vmatpush3.msra.mxu1 %v71_v6  ;;  %v58_v21 = vld [vmem:[#allocation7 + $0x20] sm:$0xff]  ;;  %v89_v22 = vld [vmem:[#allocation7 + $0x118] sm:$0xff]  ;;  %v88_v23 = vld [vmem:[#allocation7 + $0x110] sm:$0xff] }
  0x2d   :  { %491 = vmatprep.subr.mxu0 %v700_v0  ;;  %502 = vmatprep.subr.mxu1 %v700_v0  ;;  %v87_v24 = vld [vmem:[#allocation7 + $0x108] sm:$0xff]  ;;  %v86_v25 = vld [vmem:[#allocation7 + $0x100] sm:$0xff]  ;;  %v85_v26 = vld [vmem:[#allocation7 + $0xf8] sm:$0xff]  ;;  %p677_p5 = pnand %p676_p4, %p670_p1 }
  0x2e   :  { %492 = vmatpush3.msra.mxu0 %v54_v7  ;;  %503 = vmatpush3.msra.mxu1 %v70_v9  ;;  %v84_v27 = vld [vmem:[#allocation7 + $0xf0] sm:$0xff]  ;;  %v83_v28 = vld [vmem:[#allocation7 + $0xe8] sm:$0xff]  ;;  %v82_v29 = vld [vmem:[#allocation7 + $0xe0] sm:$0xff] }
  0x2f   :  { %494 = vmatmul.mubr.msk.f32.vlgmr.msra.gmra.mxu0 %vm111_vm1, %v52_v8  ;;  %504 = vmatprep.subr.mxu1 %v700_v0  ;;  %v81_v30 = vld [vmem:[#allocation7 + $0xd8] sm:$0xff]  ;;  %v80_v31 = vld [vmem:[#allocation7 + $0xd0] sm:$0xff]  ;;  %v79_v32 = vld [vmem:[#allocation7 + $0xc8] sm:$0xff]  ;;  %v264_v8 = vsub.s32 2, %v772_v35 }
  0x30   :  { %531 = vmatprep.subr.mxu0 %v700_v0  ;;  %505 = vmatpush3.msra.mxu1 %v69_v10  ;;  %v78_v33 = vld [vmem:[#allocation7 + $0xc0] sm:$0xff]  ;;  %v77_v43 = vld [vmem:[#allocation7 + $0xb8] sm:$0xff]  ;;  %v76_v44 = vld [vmem:[#allocation7 + $0xb0] sm:$0xff] }
  0x31   :  { %563 = vmatprep.mubr.msk.f32.mxu0 %vm701_vm0, %v700_v0  ;;  %506 = vmatprep.subr.mxu1 %v700_v0  ;;  %v775_v37 = vld [vmem:[#allocation7 + $0x1a0] sm:$0xff]  ;;  %v75_v45 = vld [vmem:[#allocation7 + $0xa8] sm:$0xff]  ;;  %v105_v47 = vld [vmem:[#allocation7 + $0x198] sm:$0xff] }
  0x32   :  { %507 = vmatpush3.msra.mxu1 %v68_v11  ;;  %532 = vmatpush3.msra.mxu0 %v89_v22  ;;  %v110_v38 = vrot.slane %v775_v37, %v109_v36  ;;  %v74_v46 = vld [vmem:[#allocation7 + $0xa0] sm:$0xff]  ;;  %v104_v48 = vld [vmem:[#allocation7 + $0x190] sm:$0xff]  ;;  %v103_v49 = vld [vmem:[#allocation7 + $0x188] sm:$0xff]  ;;  %v189_v61 = vrot.slane %v775_v37, %v188_v60  ;;  %v265_v9 = vrot.slane %v775_v37, %v264_v8 }
  0x33   :  { %508 = vmatprep.subr.mxu1 %v700_v0  ;;  %533 = vmatprep.subr.mxu0 %v700_v0  ;;  %v102_v50 = vld [vmem:[#allocation7 + $0x180] sm:$0xff]  ;;  %v101_v51 = vld [vmem:[#allocation7 + $0x178] sm:$0xff]  ;;  %v100_v52 = vld [vmem:[#allocation7 + $0x170] sm:$0xff] }
  0x34   :  { %509 = vmatpush3.msra.mxu1 %v67_v12  ;;  %534 = vmatpush3.msra.mxu0 %v88_v23  ;;  %v99_v53 = vld [vmem:[#allocation7 + $0x168] sm:$0xff]  ;;  %v98_v54 = vld [vmem:[#allocation7 + $0x160] sm:$0xff]  ;;  %v97_v55 = vld [vmem:[#allocation7 + $0x158] sm:$0xff] }
  0x35   :  { %510 = vmatprep.subr.mxu1 %v700_v0  ;;  %535 = vmatprep.subr.mxu0 %v700_v0  ;;  %v96_v56 = vld [vmem:[#allocation7 + $0x150] sm:$0xff]  ;;  %v95_v57 = vld [vmem:[#allocation7 + $0x148] sm:$0xff]  ;;  %v94_v58 = vld [vmem:[#allocation7 + $0x140] sm:$0xff] }
  0x36   :  { %511 = vmatpush3.msra.mxu1 %v66_v13  ;;  %536 = vmatpush3.msra.mxu0 %v87_v24  ;;  %v93_v59 = vld [vmem:[#allocation7 + $0x138] sm:$0xff]  ;;  %v92_v5 = vld [vmem:[#allocation7 + $0x130] sm:$0xff]  ;;  %v91_v6 = vld [vmem:[#allocation7 + $0x128] sm:$0xff] }
  0x37   :  { %512 = vmatprep.subr.mxu1 %v700_v0  ;;  %537 = vmatprep.subr.mxu0 %v700_v0  ;;  %v53_v1 = vld [vmem:[#allocation5] sm:$0x3]  ;;  %v90_v7 = vld [vmem:[#allocation7 + $0x120] sm:$0xff] }
  0x38   :  { %513 = vmatpush3.msra.mxu1 %v65_v14  ;;  %538 = vmatpush3.msra.mxu0 %v86_v25  ;;  %v339_v14 = vsub.s32 3, %v772_v35 }
  0x39   :  { %514 = vmatprep.subr.mxu1 %v700_v0  ;;  %539 = vmatprep.subr.mxu0 %v700_v0 }
  0x3a   :  { %515 = vmatpush3.msra.mxu1 %v64_v15  ;;  %540 = vmatpush3.msra.mxu0 %v85_v26  ;;  %v340_v15 = vrot.slane %v775_v37, %v339_v14 }
  0x3b   :  { %516 = vmatprep.subr.mxu1 %v700_v0  ;;  %541 = vmatprep.subr.mxu0 %v700_v0 }
  0x3c   :  { %517 = vmatpush3.msra.mxu1 %v63_v16  ;;  %542 = vmatpush3.msra.mxu0 %v84_v27 }
  0x3d   :  { %518 = vmatprep.subr.mxu1 %v700_v0  ;;  %543 = vmatprep.subr.mxu0 %v700_v0 }
  0x3e   :  { %519 = vmatpush3.msra.mxu1 %v62_v17  ;;  %544 = vmatpush3.msra.mxu0 %v83_v28 }
  0x3f   :  { %520 = vmatprep.subr.mxu1 %v700_v0  ;;  %545 = vmatprep.subr.mxu0 %v700_v0 }
  0x40   :  { %521 = vmatpush3.msra.mxu1 %v61_v18  ;;  %546 = vmatpush3.msra.mxu0 %v82_v29 }
  0x41   :  { %522 = vmatprep.subr.mxu1 %v700_v0  ;;  %547 = vmatprep.subr.mxu0 %v700_v0 }
  0x42   :  { %523 = vmatpush3.msra.mxu1 %v60_v19  ;;  %548 = vmatpush3.msra.mxu0 %v81_v30 }
  0x43   :  { %524 = vmatprep.subr.mxu1 %v700_v0  ;;  %549 = vmatprep.subr.mxu0 %v700_v0 }
  0x44   :  { %525 = vmatpush3.msra.mxu1 %v59_v20  ;;  %550 = vmatpush3.msra.mxu0 %v80_v31 }
  0x45   :  { %526 = vmatprep.subr.mxu1 %v700_v0  ;;  %551 = vmatprep.subr.mxu0 %v700_v0 }
  0x46   :  { %527 = vmatpush3.msra.mxu1 %v58_v21  ;;  %552 = vmatpush3.msra.mxu0 %v79_v32 }
  0x47   :  { %566 = vmatprep.subr.mxu1 %v700_v0  ;;  %553 = vmatprep.subr.mxu0 %v700_v0 }
  0x48   :  { %554 = vmatpush3.msra.mxu0 %v78_v33 }
  0x49   :  { %555 = vmatprep.subr.mxu0 %v700_v0 }
  0x4a   :  { %556 = vmatpush3.msra.mxu0 %v77_v43 }
  0x4b   :  { %557 = vmatprep.subr.mxu0 %v700_v0 }
  0x4c   :  { %558 = vmatpush3.msra.mxu0 %v76_v44 }
  0x4d   :  { %559 = vmatprep.subr.mxu0 %v700_v0 }
  0x4e   :  { %560 = vmatpush3.msra.mxu0 %v75_v45 }
  0x4f   :  { %561 = vmatprep.subr.mxu0 %v700_v0 }
  0x50   :  { %562 = vmatpush3.msra.mxu0 %v74_v46 }
  0xef   :  { %v181_v39 = vpop.f32.mrf.mxu0 }
  0xf0   :  { %v182_v40 = vadd.f32 %v181_v39, %v110_v38 }
  0xf1   :  { %v495_v41 = vpop.f32.mrf.mxu0 }
  0xf2   :  { %v185_v42 = vmax.f32 %v182_v40, 0.0 }
  0xf4   :  { %529 = vmatmul.mubr.f32.vlgmr.msra.gmra.mxu1 %v185_v42 }
  0xf5   :  { %598 = vmatprep.mubr.msk.f32.mxu1 %vm701_vm0, %v700_v0  ;;  %567 = vmatpush3.msra.mxu1 %v105_v47 }
  0xf6   :  { %568 = vmatprep.subr.mxu1 %v700_v0 }
  0xf7   :  { %569 = vmatpush3.msra.mxu1 %v104_v48 }
  0xf8   :  { %570 = vmatprep.subr.mxu1 %v700_v0 }
  0xf9   :  { %571 = vmatpush3.msra.mxu1 %v103_v49 }
  0xfa   :  { %572 = vmatprep.subr.mxu1 %v700_v0 }
  0xfb   :  { %573 = vmatpush3.msra.mxu1 %v102_v50 }
  0xfc   :  { %574 = vmatprep.subr.mxu1 %v700_v0 }
  0xfd   :  { %575 = vmatpush3.msra.mxu1 %v101_v51 }
  0xfe   :  { %576 = vmatprep.subr.mxu1 %v700_v0 }
  0xff   :  { %577 = vmatpush3.msra.mxu1 %v100_v52 }
 0x100   :  { %578 = vmatprep.subr.mxu1 %v700_v0 }
 0x101   :  { %579 = vmatpush3.msra.mxu1 %v99_v53 }
 0x102   :  { %580 = vmatprep.subr.mxu1 %v700_v0 }
 0x103   :  { %581 = vmatpush3.msra.mxu1 %v98_v54 }
 0x104   :  { %582 = vmatprep.subr.mxu1 %v700_v0 }
 0x105   :  { %583 = vmatpush3.msra.mxu1 %v97_v55 }
 0x106   :  { %584 = vmatprep.subr.mxu1 %v700_v0 }
 0x107   :  { %585 = vmatpush3.msra.mxu1 %v96_v56 }
 0x108   :  { %586 = vmatprep.subr.mxu1 %v700_v0 }
 0x109   :  { %587 = vmatpush3.msra.mxu1 %v95_v57 }
 0x10a   :  { %588 = vmatprep.subr.mxu1 %v700_v0 }
 0x10b   :  { %589 = vmatpush3.msra.mxu1 %v94_v58 }
 0x10c   :  { %590 = vmatprep.subr.mxu1 %v700_v0 }
 0x10d   :  { %591 = vmatpush3.msra.mxu1 %v93_v59 }
 0x10e   :  { %592 = vmatprep.subr.mxu1 %v700_v0 }
 0x10f   :  { %593 = vmatpush3.msra.mxu1 %v92_v5 }
 0x110   :  { %594 = vmatprep.subr.mxu1 %v700_v0 }
 0x111   :  { %595 = vmatpush3.msra.mxu1 %v91_v6 }
 0x112   :  { %596 = vmatprep.subr.mxu1 %v700_v0 }
 0x113   :  { %597 = vmatpush3.msra.mxu1 %v90_v7 }
 0x1b4   :  { %v256_v62 = vpop.f32.mrf.mxu1 }
 0x1b5   :  { %v257_v63 = vadd.f32 %v256_v62, %v189_v61 }
 0x1b6   :  { %v530_v2 = vpop.f32.mrf.mxu1 }
 0x1b7   :  { %v260_v3 = vmax.f32 %v257_v63, 0.0 }
 0x1b9   :  { %v261_v4 = vadd.f32 %v260_v3, %v53_v1 }
 0x1bb   :  { %564 = vmatmul.mubr.f32.vlgmr.msra.gmra.mxu0 %v261_v4 }
 0x27b   :  { %v332_v10 = vpop.f32.mrf.mxu0 }
 0x27c   :  { %v333_v11 = vadd.f32 %v332_v10, %v265_v9 }
 0x27d   :  { %v565_v12 = vpop.f32.mrf.mxu0 }
 0x27e   :  { %v336_v13 = vmax.f32 %v333_v11, 0.0 }
 0x280   :  { %599 = vmatmul.mubr.f32.vlgmr.msra.gmra.mxu1 %v336_v13 }
 0x340   :  { %v407_v16 = vpop.f32.mrf.mxu1 }
 0x341   :  { %v408_v17 = vadd.f32 %v407_v16, %v340_v15 }
 0x342   :  { %v600_v0 = vpop.f32.mrf.mxu1 }
 0x343   :  { %411 = vst [vmem:[#allocation8] sm:$0x3] %v408_v17 }
 0x344   :  { %680 = shalt.err (!%p677_p5)
}
 0x345   :  { %421 = dma.vmem_to_hbm [thread:$0]  %s419_s2, 32, %s810_s3, [#allocation4]  }
 0x346   :  { %693 = dma.done.wait [#allocation4], 32  }
 0x347   :  { %694 = vsyncadd [#allocation4], 4294967264 }
 0x348   :  { %425 = vsyncpa [#allocation3], 1 }
 0x349   :  { %426 = vsyncpa [#allocation6], 1 }
 0x34a   :  { %427 = vsyncpa [#allocation4], 1 }

</bundles_post_ra>
